<compile_context>
chip_gen: v6e
topology: v6e:2x2x1
jax: 0.10.0
libtpu: 0.0.40
codegen_flags: <defaults>
</compile_context>

<pallas_src>
import itertools
from functools import partial

import numpy as np
import jax
import jax.numpy as jnp
from jax.experimental import pallas as pl
from jax.experimental.pallas import tpu as pltpu


# ---------------------------------------------------------------------------
# Deterministic constants (standard JPEG tables, IDCT basis), as in DiffJPEG.
# ---------------------------------------------------------------------------
_Y_TABLE_NP = np.array(
    [[16, 11, 10, 16, 24, 40, 51, 61],
     [12, 12, 14, 19, 26, 58, 60, 55],
     [14, 13, 16, 24, 40, 57, 69, 56],
     [14, 17, 22, 29, 51, 87, 80, 62],
     [18, 22, 37, 56, 68, 109, 103, 77],
     [24, 35, 55, 64, 81, 104, 113, 92],
     [49, 64, 78, 87, 103, 121, 120, 101],
     [72, 92, 95, 98, 112, 100, 103, 99]], dtype=np.float32).T

_C_TABLE_NP = np.full((8, 8), 99, dtype=np.float32)
_C_TABLE_NP[:4, :4] = np.array(
    [[17, 18, 24, 47],
     [18, 21, 26, 66],
     [24, 26, 56, 99],
     [47, 66, 99, 99]], dtype=np.float32).T

_alpha_1d = np.array([1.0 / np.sqrt(2.0)] + [1.0] * 7, dtype=np.float32)
_ALPHA_NP = np.outer(_alpha_1d, _alpha_1d).astype(np.float32)

_IDCT_T_NP = np.zeros((8, 8, 8, 8), dtype=np.float32)
for _x, _y, _u, _v in itertools.product(range(8), repeat=4):
    _IDCT_T_NP[_x, _y, _u, _v] = (np.cos((2 * _u + 1) * _x * np.pi / 16.0) *
                                  np.cos((2 * _v + 1) * _y * np.pi / 16.0))


def _fused_idct_mat(table_np: np.ndarray, factor: float) -> np.ndarray:
    """(64,64) matrix M with  spatial_flat = coef_flat @ M  (dequant+alpha+0.25+IDCT)."""
    scale = table_np.astype(np.float32) * float(factor) * _ALPHA_NP           # (8,8)
    return (0.25 * scale[:, :, None, None] * _IDCT_T_NP).reshape(64, 64)


def _pick_tile(rows: int, cap: int, mult: int):
    """Pick a row tile for a lane-dense slab of `rows` rows.

    Preference order: (a) tile divides `rows` exactly (no jnp.pad HBM copy),
    (b) tile is a multiple of `mult` (keeps every BlockSpec dim sublane-aligned,
    including the half-size chroma tile), (c) >=2 grid steps so v7x's two
    TensorCores both get work.  Falls back to a single full-array tile, and
    only pads as a last resort for huge awkward sizes.
    Returns (tile, padded_rows).
    """
    limit = min(cap, rows)
    for min_steps in (2, 1):
        t = (limit // mult) * mult
        while t >= mult:
            if rows % t == 0 and rows // t >= min_steps:
                return t, rows
            t -= mult
    if rows <= cap:
        return rows, rows                      # single full tile (block dim == array dim)
    t = (cap // mult) * mult
    return t, ((rows + t - 1) // t) * t        # rare fallback: bounded padding


# ---------------------------------------------------------------------------
# Kernel 1: fused dequantize + 8x8 IDCT for y, cb and cr in one pass.
#   y rows pack two flattened 8x8 blocks per 128 lanes (block-diag weight),
#   chroma rows hold one flattened block in 64 lanes.  +128 bias only for luma.
# ---------------------------------------------------------------------------
def _dequant_idct_kernel(y_ref, cb_ref, cr_ref, wy_ref, wc_ref,
                         yo_ref, cbo_ref, cro_ref):
    yo_ref[...] = jnp.dot(y_ref[...], wy_ref[...],
                          preferred_element_type=jnp.float32) + 128.0
    wc = wc_ref[...]
    # Chroma: no +128 here -- it cancels against the -128 shift of YCbCr->RGB.
    cbo_ref[...] = jnp.dot(cb_ref[...], wc, preferred_element_type=jnp.float32)
    cro_ref[...] = jnp.dot(cr_ref[...], wc, preferred_element_type=jnp.float32)


def _dequant_idct(y, cb, cr, factor, tile_cap=4096):
    b, n_y = y.shape[0], y.shape[1]
    n_c = cb.shape[1]
    ry = (b * n_y * 64) // 128           # pair-packed luma rows (2 blocks / row)
    rc = b * n_c                         # chroma rows (1 block / row, 64 lanes)
    assert 2 * rc == ry                  # n_y == 4 * n_c for 4:2:0

    ty, pry = _pick_tile(ry, tile_cap, 16)
    tc, prc = ty // 2, pry // 2
    steps = pry // ty

    m_y = _fused_idct_mat(_Y_TABLE_NP, factor)
    w_y = np.zeros((128, 128), np.float32)
    w_y[:64, :64] = m_y
    w_y[64:, 64:] = m_y
    w_c = _fused_idct_mat(_C_TABLE_NP, factor)

    y_slab = y.reshape(ry, 128).astype(jnp.float32)      # pure reshapes, no copy
    cb_slab = cb.reshape(rc, 64).astype(jnp.float32)
    cr_slab = cr.reshape(rc, 64).astype(jnp.float32)
    if pry != ry:                                         # rare padding fallback
        y_slab = jnp.pad(y_slab, ((0, pry - ry), (0, 0)))
        cb_slab = jnp.pad(cb_slab, ((0, prc - rc), (0, 0)))
        cr_slab = jnp.pad(cr_slab, ((0, prc - rc), (0, 0)))

    flops = 2 * pry * 128 * 128 + 2 * (2 * prc * 64 * 64)
    bytes_acc = 4 * (2 * pry * 128 + 4 * prc * 64 + 128 * 128 + 64 * 64)

    y_sp, cb_sp, cr_sp = pl.pallas_call(
        _dequant_idct_kernel,
        out_shape=(jax.ShapeDtypeStruct((pry, 128), jnp.float32),
                   jax.ShapeDtypeStruct((prc, 64), jnp.float32),
                   jax.ShapeDtypeStruct((prc, 64), jnp.float32)),
        grid_spec=pltpu.PrefetchScalarGridSpec(
            num_scalar_prefetch=0,
            grid=(steps,),
            in_specs=[
                pl.BlockSpec((ty, 128), lambda i: (i, 0)),
                pl.BlockSpec((tc, 64), lambda i: (i, 0)),
                pl.BlockSpec((tc, 64), lambda i: (i, 0)),
                pl.BlockSpec((128, 128), lambda i: (0, 0)),   # weights stay resident
                pl.BlockSpec((64, 64), lambda i: (0, 0)),
            ],
            out_specs=[
                pl.BlockSpec((ty, 128), lambda i: (i, 0)),
                pl.BlockSpec((tc, 64), lambda i: (i, 0)),
                pl.BlockSpec((tc, 64), lambda i: (i, 0)),
            ]),
        compiler_params=pltpu.CompilerParams(
            dimension_semantics=("parallel",)),
        cost_estimate=pl.CostEstimate(flops=int(flops), transcendentals=0,
                                      bytes_accessed=int(bytes_acc)),
    )(y_slab, cb_slab, cr_slab, jnp.asarray(w_y), jnp.asarray(w_c))

    if pry != ry:
        y_sp, cb_sp, cr_sp = y_sp[:ry], cb_sp[:rc], cr_sp[:rc]
    return (y_sp.reshape(b, n_y, 8, 8),
            cb_sp.reshape(b, n_c, 8, 8),
            cr_sp.reshape(b, n_c, 8, 8))


# ---------------------------------------------------------------------------
# Kernel 2: YCbCr -> RGB + clamp[0,255] + /255, writes (B, 3, rows, 128) so the
# final reshape to (B, 3, H, W) is free (no XLA channel transpose).
# ---------------------------------------------------------------------------
def _ycbcr_to_rgb_kernel(y_ref, cb_ref, cr_ref, o_ref):
    yv = y_ref[0, :, :]            # (tile, 128); +128 already folded in by kernel 1
    cb = cb_ref[0, :, :]           # already centered: kernel 1 skipped the +128
    cr = cr_ref[0, :, :]
    inv255 = 1.0 / 255.0
    o_ref[0, 0, :, :] = jnp.clip(yv + 1.402 * cr, 0.0, 255.0) * inv255
    o_ref[0, 1, :, :] = jnp.clip(yv - 0.344136 * cb - 0.714136 * cr,
                                 0.0, 255.0) * inv255
    o_ref[0, 2, :, :] = jnp.clip(yv + 1.772 * cb, 0.0, 255.0) * inv255


def _ycbcr_to_rgb(y_img, cb_img, cr_img, tile_cap=2048):
    """y/cb/cr images (B, H, W) -> RGB image (B, 3, H, W) in [0, 1]."""
    b, h, w = y_img.shape
    rows = (h * w) // 128                       # H, W multiples of 16 -> exact
    t2, prows = _pick_tile(rows, tile_cap, 8)

    def slab(x):
        x = x.reshape(b, rows, 128)             # free reshape
        if prows != rows:
            x = jnp.pad(x, ((0, 0), (0, prows - rows), (0, 0)))
        return x

    out = pl.pallas_call(
        _ycbcr_to_rgb_kernel,
        out_shape=jax.ShapeDtypeStruct((b, 3, prows, 128), jnp.float32),
        grid_spec=pltpu.PrefetchScalarGridSpec(
            num_scalar_prefetch=0,
            grid=(b, prows // t2),
            in_specs=[pl.BlockSpec((1, t2, 128), lambda bi, i: (bi, i, 0))
                      for _ in range(3)],
            out_specs=pl.BlockSpec((1, 3, t2, 128), lambda bi, i: (bi, 0, i, 0)),
        ),
        compiler_params=pltpu.CompilerParams(
            dimension_semantics=("parallel", "parallel")),
        cost_estimate=pl.CostEstimate(flops=int(12 * b * prows * 128),
                                      transcendentals=0,
                                      bytes_accessed=int(4 * 6 * b * prows * 128)),
    )(slab(y_img), slab(cb_img), slab(cr_img))

    if prows != rows:
        out = out[:, :, :rows, :]
    return out.reshape(b, 3, h, w)              # free reshape, no transpose


# ---------------------------------------------------------------------------
# Pure-layout stages (no compute): block merge + chroma 2x2 upsample.
# ---------------------------------------------------------------------------
def _block_merge(blocks, height, width):
    # TODO(synk): fold into kernel 1 via weight-column permutation + in-VMEM
    # re-tile (saves one HBM pass per component); kept in XLA to avoid relying
    # on Mosaic relayout lowering for small-lane-dim transposes.
    b = blocks.shape[0]
    x = blocks.reshape(b, height // 8, width // 8, 8, 8)
    return x.transpose(0, 1, 3, 2, 4).reshape(b, height, width)


def _chroma_upsample(x):
    # TODO(synk): read chroma at half resolution in kernel 2 and upsample in
    # VMEM (saves the full-res chroma write+read); deferred for the same reason.
    return jnp.repeat(jnp.repeat(x, 2, axis=1), 2, axis=2)


# ---------------------------------------------------------------------------
# Full decompress_jpeg forward.
# ---------------------------------------------------------------------------
@partial(jax.jit, static_argnames=("height", "width", "factor"))
def decompress_jpeg(y, cb, cr, *, height, width, factor=1.0):
    assert height % 16 == 0 and width % 16 == 0
    y_sp, cb_sp, cr_sp = _dequant_idct(y, cb, cr, factor)

    y_img = _block_merge(y_sp, height, width)
    cb_img = _chroma_upsample(_block_merge(cb_sp, height // 2, width // 2))
    cr_img = _chroma_upsample(_block_merge(cr_sp, height // 2, width // 2))

    return _ycbcr_to_rgb(y_img, cb_img, cr_img)


# ---------------------------------------------------------------------------
# Pure-JAX reference (faithful mirror of the PyTorch module) for validation.
# ---------------------------------------------------------------------------
def _reference_decompress(y, cb, cr, height, width, factor=1.0):
    hp = jax.lax.Precision.HIGHEST

    def dequant_idct(comp, table):
        img = comp * (jnp.asarray(table) * factor)
        img = img * jnp.asarray(_ALPHA_NP)
        return 0.25 * jnp.einsum("bnxy,xyuv->bnuv", img,
                                 jnp.asarray(_IDCT_T_NP), precision=hp) + 128.0

    def merge(blocks, h, w):
        b = blocks.shape[0]
        return (blocks.reshape(b, h // 8, w // 8, 8, 8)
                .transpose(0, 1, 3, 2, 4).reshape(b, h, w))

    y_i = merge(dequant_idct(y, _Y_TABLE_NP), height, width)
    cb_i = merge(dequant_idct(cb, _C_TABLE_NP), height // 2, width // 2)
    cr_i = merge(dequant_idct(cr, _C_TABLE_NP), height // 2, width // 2)
    cb_u, cr_u = _chroma_upsample(cb_i), _chroma_upsample(cr_i)

    r = y_i + 1.402 * (cr_u - 128.0)
    g = y_i - 0.344136 * (cb_u - 128.0) - 0.714136 * (cr_u - 128.0)
    b = y_i + 1.772 * (cb_u - 128.0)
    img = jnp.stack([r, g, b], axis=1)
    return jnp.clip(img, 0.0, 255.0) / 255.0


if __name__ == "__main__":
    key = jax.random.PRNGKey(0)
    B, H, W = 2, 16, 16
    factor = 1.0
    n_y = (H // 8) * (W // 8)        # luma 8x8 blocks per image
    n_c = (H // 16) * (W // 16)      # chroma 8x8 blocks per image (half-res)

    k1, k2, k3 = jax.random.split(key, 3)
    y = jnp.round(jax.random.normal(k1, (B, n_y, 8, 8), dtype=jnp.float32) * 2.0)
    cb = jnp.round(jax.random.normal(k2, (B, n_c, 8, 8), dtype=jnp.float32) * 2.0)
    cr = jnp.round(jax.random.normal(k3, (B, n_c, 8, 8), dtype=jnp.float32) * 2.0)

    out = decompress_jpeg(y, cb, cr, height=H, width=W, factor=factor)
    out = jax.block_until_ready(out)
    assert out.shape == (B, 3, H, W)

    ref = jax.block_until_ready(_reference_decompress(y, cb, cr, H, W, factor))
    # Tolerance covers MXU f32 multi-pass scheme differences vs the
    # HIGHEST-precision XLA reference; structural bugs would be >10x larger.
    np.testing.assert_allclose(np.asarray(out), np.asarray(ref), rtol=0.0, atol=3e-2)

    print("KERNEL_OK")
</pallas_src>

<mosaic_0001>
module attributes {stable_mosaic.version = 11 : i64} {
  func.func @_dequant_idct_kernel(%arg0: i32, %arg1: memref<4x128xf32, #tpu.memory_space<vmem>>, %arg2: memref<2x64xf32, #tpu.memory_space<vmem>>, %arg3: memref<2x64xf32, #tpu.memory_space<vmem>>, %arg4: memref<128x128xf32, #tpu.memory_space<vmem>>, %arg5: memref<64x64xf32, #tpu.memory_space<vmem>>, %arg6: memref<4x128xf32, #tpu.memory_space<vmem>>, %arg7: memref<2x64xf32, #tpu.memory_space<vmem>>, %arg8: memref<2x64xf32, #tpu.memory_space<vmem>>) attributes {dimension_semantics = [#tpu.dimension_semantics<parallel>], iteration_bounds = array<i64: 1>, scalar_prefetch = 0 : i64, scratch_operands = 0 : i64, tpu.core_type = #tpu.core_type<tc>, window_params = [{transform_indices = @transform_0, window_bounds = array<i64: 4, 128>}, {transform_indices = @transform_1, window_bounds = array<i64: 2, 64>}, {transform_indices = @transform_2, window_bounds = array<i64: 2, 64>}, {pipeline_mode = #tpu.pipeline_mode<synchronous>, transform_indices = @transform_3, window_bounds = array<i64: 128, 128>}, {pipeline_mode = #tpu.pipeline_mode<synchronous>, transform_indices = @transform_4, window_bounds = array<i64: 64, 64>}, {transform_indices = @transform_5, window_bounds = array<i64: 4, 128>}, {transform_indices = @transform_6, window_bounds = array<i64: 2, 64>}, {transform_indices = @transform_7, window_bounds = array<i64: 2, 64>}]} {
    %c0 = arith.constant 0 : index
    %c0_0 = arith.constant 0 : index
    %0 = vector.load %arg1[%c0, %c0_0] : memref<4x128xf32, #tpu.memory_space<vmem>>, vector<4x128xf32>
    %c0_1 = arith.constant 0 : index
    %c0_2 = arith.constant 0 : index
    %1 = vector.load %arg4[%c0_1, %c0_2] : memref<128x128xf32, #tpu.memory_space<vmem>>, vector<128x128xf32>
    %cst = arith.constant dense<0.000000e+00> : vector<4x128xf32>
    %2 = tpu.matmul %0, %1, %cst {dimension_numbers = #tpu.dot_dimension_numbers<[1], [0], [0], [1], [0, 0, 1, 1], [], []>} : vector<4x128xf32>, vector<128x128xf32>, vector<4x128xf32> -> vector<4x128xf32>
    %cst_3 = arith.constant 1.280000e+02 : f32
    %3 = vector.broadcast %cst_3 : f32 to vector<4x128xf32>
    %4 = arith.addf %2, %3 : vector<4x128xf32>
    %c0_4 = arith.constant 0 : index
    %c0_5 = arith.constant 0 : index
    %5 = vector.load %arg6[%c0_4, %c0_5] : memref<4x128xf32, #tpu.memory_space<vmem>>, vector<4x128xf32>
    tpu.vector_store %arg6[%c0_4, %c0_5], %4 {strides = array<i32>} : memref<4x128xf32, #tpu.memory_space<vmem>>, vector<4x128xf32>,
    %c0_6 = arith.constant 0 : index
    %c0_7 = arith.constant 0 : index
    %6 = vector.load %arg5[%c0_6, %c0_7] : memref<64x64xf32, #tpu.memory_space<vmem>>, vector<64x64xf32>
    %c0_8 = arith.constant 0 : index
    %c0_9 = arith.constant 0 : index
    %7 = vector.load %arg2[%c0_8, %c0_9] : memref<2x64xf32, #tpu.memory_space<vmem>>, vector<2x64xf32>
    %cst_10 = arith.constant dense<0.000000e+00> : vector<2x64xf32>
    %8 = tpu.matmul %7, %6, %cst_10 {dimension_numbers = #tpu.dot_dimension_numbers<[1], [0], [0], [1], [0, 0, 1, 1], [], []>} : vector<2x64xf32>, vector<64x64xf32>, vector<2x64xf32> -> vector<2x64xf32>
    %c0_11 = arith.constant 0 : index
    %c0_12 = arith.constant 0 : index
    %9 = vector.load %arg7[%c0_11, %c0_12] : memref<2x64xf32, #tpu.memory_space<vmem>>, vector<2x64xf32>
    tpu.vector_store %arg7[%c0_11, %c0_12], %8 {strides = array<i32>} : memref<2x64xf32, #tpu.memory_space<vmem>>, vector<2x64xf32>,
    %c0_13 = arith.constant 0 : index
    %c0_14 = arith.constant 0 : index
    %10 = vector.load %arg3[%c0_13, %c0_14] : memref<2x64xf32, #tpu.memory_space<vmem>>, vector<2x64xf32>
    %cst_15 = arith.constant dense<0.000000e+00> : vector<2x64xf32>
    %11 = tpu.matmul %10, %6, %cst_15 {dimension_numbers = #tpu.dot_dimension_numbers<[1], [0], [0], [1], [0, 0, 1, 1], [], []>} : vector<2x64xf32>, vector<64x64xf32>, vector<2x64xf32> -> vector<2x64xf32>
    %c0_16 = arith.constant 0 : index
    %c0_17 = arith.constant 0 : index
    %12 = vector.load %arg8[%c0_16, %c0_17] : memref<2x64xf32, #tpu.memory_space<vmem>>, vector<2x64xf32>
    tpu.vector_store %arg8[%c0_16, %c0_17], %11 {strides = array<i32>} : memref<2x64xf32, #tpu.memory_space<vmem>>, vector<2x64xf32>,
    return
  }
  func.func @transform_0(%arg0: i32) -> (i32, i32) {
    %c0_i32 = arith.constant 0 : i32
    %c0_i32_0 = arith.constant 0 : i32
    return %arg0, %c0_i32 : i32, i32
  }
  func.func @transform_1(%arg0: i32) -> (i32, i32) {
    %c0_i32 = arith.constant 0 : i32
    %c0_i32_0 = arith.constant 0 : i32
    return %arg0, %c0_i32 : i32, i32
  }
  func.func @transform_2(%arg0: i32) -> (i32, i32) {
    %c0_i32 = arith.constant 0 : i32
    %c0_i32_0 = arith.constant 0 : i32
    return %arg0, %c0_i32 : i32, i32
  }
  func.func @transform_3(%arg0: i32) -> (i32, i32) {
    %c0_i32 = arith.constant 0 : i32
    %c0_i32_0 = arith.constant 0 : i32
    %c0_i32_1 = arith.constant 0 : i32
    return %c0_i32, %c0_i32_0 : i32, i32
  }
  func.func @transform_4(%arg0: i32) -> (i32, i32) {
    %c0_i32 = arith.constant 0 : i32
    %c0_i32_0 = arith.constant 0 : i32
    %c0_i32_1 = arith.constant 0 : i32
    return %c0_i32, %c0_i32_0 : i32, i32
  }
  func.func @transform_5(%arg0: i32) -> (i32, i32) {
    %c0_i32 = arith.constant 0 : i32
    %c0_i32_0 = arith.constant 0 : i32
    return %arg0, %c0_i32 : i32, i32
  }
  func.func @transform_6(%arg0: i32) -> (i32, i32) {
    %c0_i32 = arith.constant 0 : i32
    %c0_i32_0 = arith.constant 0 : i32
    return %arg0, %c0_i32 : i32, i32
  }
  func.func @transform_7(%arg0: i32) -> (i32, i32) {
    %c0_i32 = arith.constant 0 : i32
    %c0_i32_0 = arith.constant 0 : i32
    return %arg0, %c0_i32 : i32, i32
  }
}

module attributes {stable_mosaic.version = 11 : i64} {
  func.func @_ycbcr_to_rgb_kernel(%arg0: i32, %arg1: i32, %arg2: memref<1x2x128xf32, #tpu.memory_space<vmem>>, %arg3: memref<1x2x128xf32, #tpu.memory_space<vmem>>, %arg4: memref<1x2x128xf32, #tpu.memory_space<vmem>>, %arg5: memref<1x3x2x128xf32, #tpu.memory_space<vmem>>) attributes {dimension_semantics = [#tpu.dimension_semantics<parallel>, #tpu.dimension_semantics<parallel>], iteration_bounds = array<i64: 2, 1>, scalar_prefetch = 0 : i64, scratch_operands = 0 : i64, tpu.core_type = #tpu.core_type<tc>, window_params = [{transform_indices = @transform_0, window_bounds = array<i64: 1, 2, 128>}, {transform_indices = @transform_1, window_bounds = array<i64: 1, 2, 128>}, {transform_indices = @transform_2, window_bounds = array<i64: 1, 2, 128>}, {transform_indices = @transform_3, window_bounds = array<i64: 1, 3, 2, 128>}]} {
    %c0 = arith.constant 0 : index
    %c0_0 = arith.constant 0 : index
    %c0_1 = arith.constant 0 : index
    %0 = vector.load %arg2[%c0, %c0_0, %c0_1] : memref<1x2x128xf32, #tpu.memory_space<vmem>>, vector<1x2x128xf32>
    %1 = vector.shape_cast %0 : vector<1x2x128xf32> to vector<2x128xf32>
    %c0_2 = arith.constant 0 : index
    %c0_3 = arith.constant 0 : index
    %c0_4 = arith.constant 0 : index
    %2 = vector.load %arg3[%c0_2, %c0_3, %c0_4] : memref<1x2x128xf32, #tpu.memory_space<vmem>>, vector<1x2x128xf32>
    %3 = vector.shape_cast %2 : vector<1x2x128xf32> to vector<2x128xf32>
    %c0_5 = arith.constant 0 : index
    %c0_6 = arith.constant 0 : index
    %c0_7 = arith.constant 0 : index
    %4 = vector.load %arg4[%c0_5, %c0_6, %c0_7] : memref<1x2x128xf32, #tpu.memory_space<vmem>>, vector<1x2x128xf32>
    %5 = vector.shape_cast %4 : vector<1x2x128xf32> to vector<2x128xf32>
    %cst = arith.constant 1.402000e+00 : f32
    %6 = vector.broadcast %cst : f32 to vector<2x128xf32>
    %7 = arith.mulf %6, %5 : vector<2x128xf32>
    %8 = arith.addf %1, %7 : vector<2x128xf32>
    %cst_8 = arith.constant 0.000000e+00 : f32
    %cst_9 = arith.constant 2.550000e+02 : f32
    %9 = vector.broadcast %cst_8 : f32 to vector<2x128xf32>
    %10 = arith.maximumf %9, %8 : vector<2x128xf32>
    %11 = vector.broadcast %cst_9 : f32 to vector<2x128xf32>
    %12 = arith.minimumf %11, %10 : vector<2x128xf32>
    %cst_10 = arith.constant 0.00392156886 : f32
    %13 = vector.broadcast %cst_10 : f32 to vector<2x128xf32>
    %14 = arith.mulf %12, %13 : vector<2x128xf32>
    %c0_11 = arith.constant 0 : index
    %c0_12 = arith.constant 0 : index
    %c0_13 = arith.constant 0 : index
    %c0_14 = arith.constant 0 : index
    %15 = vector.load %arg5[%c0_11, %c0_12, %c0_13, %c0_14] : memref<1x3x2x128xf32, #tpu.memory_space<vmem>>, vector<1x1x2x128xf32>
    %16 = vector.shape_cast %15 : vector<1x1x2x128xf32> to vector<2x128xf32>
    %17 = vector.shape_cast %14 : vector<2x128xf32> to vector<1x1x2x128xf32>
    tpu.vector_store %arg5[%c0_11, %c0_12, %c0_13, %c0_14], %17 {strides = array<i32>} : memref<1x3x2x128xf32, #tpu.memory_space<vmem>>, vector<1x1x2x128xf32>,
    %cst_15 = arith.constant 3.441360e-01 : f32
    %18 = vector.broadcast %cst_15 : f32 to vector<2x128xf32>
    %19 = arith.mulf %18, %3 : vector<2x128xf32>
    %20 = arith.subf %1, %19 : vector<2x128xf32>
    %cst_16 = arith.constant 7.141360e-01 : f32
    %21 = vector.broadcast %cst_16 : f32 to vector<2x128xf32>
    %22 = arith.mulf %21, %5 : vector<2x128xf32>
    %23 = arith.subf %20, %22 : vector<2x128xf32>
    %cst_17 = arith.constant 0.000000e+00 : f32
    %cst_18 = arith.constant 2.550000e+02 : f32
    %24 = vector.broadcast %cst_17 : f32 to vector<2x128xf32>
    %25 = arith.maximumf %24, %23 : vector<2x128xf32>
    %26 = vector.broadcast %cst_18 : f32 to vector<2x128xf32>
    %27 = arith.minimumf %26, %25 : vector<2x128xf32>
    %cst_19 = arith.constant 0.00392156886 : f32
    %28 = vector.broadcast %cst_19 : f32 to vector<2x128xf32>
    %29 = arith.mulf %27, %28 : vector<2x128xf32>
    %c0_20 = arith.constant 0 : index
    %c1 = arith.constant 1 : index
    %c0_21 = arith.constant 0 : index
    %c0_22 = arith.constant 0 : index
    %30 = vector.load %arg5[%c0_20, %c1, %c0_21, %c0_22] : memref<1x3x2x128xf32, #tpu.memory_space<vmem>>, vector<1x1x2x128xf32>
    %31 = vector.shape_cast %30 : vector<1x1x2x128xf32> to vector<2x128xf32>
    %32 = vector.shape_cast %29 : vector<2x128xf32> to vector<1x1x2x128xf32>
    tpu.vector_store %arg5[%c0_20, %c1, %c0_21, %c0_22], %32 {strides = array<i32>} : memref<1x3x2x128xf32, #tpu.memory_space<vmem>>, vector<1x1x2x128xf32>,
    %cst_23 = arith.constant 1.772000e+00 : f32
    %33 = vector.broadcast %cst_23 : f32 to vector<2x128xf32>
    %34 = arith.mulf %33, %3 : vector<2x128xf32>
    %35 = arith.addf %1, %34 : vector<2x128xf32>
    %cst_24 = arith.constant 0.000000e+00 : f32
    %cst_25 = arith.constant 2.550000e+02 : f32
    %36 = vector.broadcast %cst_24 : f32 to vector<2x128xf32>
    %37 = arith.maximumf %36, %35 : vector<2x128xf32>
    %38 = vector.broadcast %cst_25 : f32 to vector<2x128xf32>
    %39 = arith.minimumf %38, %37 : vector<2x128xf32>
    %cst_26 = arith.constant 0.00392156886 : f32
    %40 = vector.broadcast %cst_26 : f32 to vector<2x128xf32>
    %41 = arith.mulf %39, %40 : vector<2x128xf32>
    %c0_27 = arith.constant 0 : index
    %c2 = arith.constant 2 : index
    %c0_28 = arith.constant 0 : index
    %c0_29 = arith.constant 0 : index
    %42 = vector.load %arg5[%c0_27, %c2, %c0_28, %c0_29] : memref<1x3x2x128xf32, #tpu.memory_space<vmem>>, vector<1x1x2x128xf32>
    %43 = vector.shape_cast %42 : vector<1x1x2x128xf32> to vector<2x128xf32>
    %44 = vector.shape_cast %41 : vector<2x128xf32> to vector<1x1x2x128xf32>
    tpu.vector_store %arg5[%c0_27, %c2, %c0_28, %c0_29], %44 {strides = array<i32>} : memref<1x3x2x128xf32, #tpu.memory_space<vmem>>, vector<1x1x2x128xf32>,
    return
  }
  func.func @transform_0(%arg0: i32, %arg1: i32) -> (i32, i32, i32) {
    %c0_i32 = arith.constant 0 : i32
    %c0_i32_0 = arith.constant 0 : i32
    return %arg0, %arg1, %c0_i32 : i32, i32, i32
  }
  func.func @transform_1(%arg0: i32, %arg1: i32) -> (i32, i32, i32) {
    %c0_i32 = arith.constant 0 : i32
    %c0_i32_0 = arith.constant 0 : i32
    return %arg0, %arg1, %c0_i32 : i32, i32, i32
  }
  func.func @transform_2(%arg0: i32, %arg1: i32) -> (i32, i32, i32) {
    %c0_i32 = arith.constant 0 : i32
    %c0_i32_0 = arith.constant 0 : i32
    return %arg0, %arg1, %c0_i32 : i32, i32, i32
  }
  func.func @transform_3(%arg0: i32, %arg1: i32) -> (i32, i32, i32, i32) {
    %c0_i32 = arith.constant 0 : i32
    %c0_i32_0 = arith.constant 0 : i32
    %c0_i32_1 = arith.constant 0 : i32
    return %arg0, %c0_i32, %arg1, %c0_i32_0 : i32, i32, i32, i32
  }
}

</mosaic_0001>

<bundles_post_ra>
// kernel: decompress_jpeg.2
= control target key start
LH: loop header
LB: loop body
LE: loop exit
PB: predicated region body
PF: predicated region fallthrough
CT: control target
= control target key end

     0   :  { %13 = vsyncpa [#allocation3], 0  ;;  %s435_s24 = smov [#allocation2]   ;;  %s565_s0 = inlined_call_operand.vmem [shape: f32[4,128], index: 0, kind: input, shape index: {}]   ;;  %s566_s1 = inlined_call_operand.vmem [shape: f32[2,64], index: 1, kind: input, shape index: {}]   ;;  %s567_s2 = inlined_call_operand.vmem [shape: f32[2,64], index: 2, kind: input, shape index: {}]   ;;  %s568_s3 = inlined_call_operand.hbm [shape: f32[128,128], index: 3, kind: input, shape index: {}]   ;;  %s569_s4 = inlined_call_operand.vmem [shape: f32[64,64], index: 4, kind: input, shape index: {}]   ;;  %s570_s5 = inlined_call_operand.vmem [shape: f32[4,128], index: 5, kind: output, shape index: {0}]   ;;  %s571_s6 = inlined_call_operand.vmem [shape: f32[2,64], index: 6, kind: output, shape index: {1}]   ;;  %s572_s7 = inlined_call_operand.vmem [shape: f32[2,64], index: 7, kind: output, shape index: {2}]  }
   0x1   :  { %s25_s25 = sshll.u32 %s435_s24, 4  ;;  %s26_s25 = int_to_ptr.vmem [resolvable:$true] %s25_s25 }
   0x2   :  { %s421_s26 = scalar_lea.vmem %s26_s25, 2048  ;;  %p426_p1 = scmp.lt.s32.totalorder %s26_s25, %s26_s25 }
   0x3   :  { %p422_p0 = scmp.ne.s32.totalorder %s26_s25, %s421_s26  ;;  %p427_p2 = scmp.lt.s32.totalorder %s421_s26, %s421_s26 }
   0x5   :  { %p428_p3 = por %p427_p2, %p426_p1 }
   0x7   :  { %p429_p4 = pnand %p428_p3, %p422_p0 }
   0x9   :  { %432 = shalt.err (!%p429_p4)
}
   0xa   :  { %s436_s27 = smov 128   ;;  %s437_s28 = smov 8  }
   0xb   :  { %31 = dma.hbm_to_vmem [thread:$0]  %s568_s3, 2048, %s26_s25, [#allocation3], %s436_s27, %s436_s27, %s437_s28  }
   0xc   :  { %433 = dma.done.wait [#allocation3], 2048  }
   0xd   :  { %434 = vsyncadd [#allocation3], 4294965248  ;;  %v438_v0 = vmov 0.0   ;;  %vm439_vm0 = vmmov 0   ;;  %v53_v1 = vld [vmem:[#allocation2 + $0x78] sm:$0xff]  ;;  %v52_v3 = vld [vmem:[#allocation2 + $0x70] sm:$0xff] }
   0xe   :  { %335 = vmatprep.subr.mxu0 %v438_v0  ;;  %370 = vmatprep.subr.mxu1 %v438_v0  ;;  %v132_v2 = vld [vmem:[%s569_s4 + $0x38] sm:$0xff]  ;;  %v131_v4 = vld [vmem:[%s569_s4 + $0x30] sm:$0xff]  ;;  %v51_v5 = vld [vmem:[#allocation2 + $0x68] sm:$0xff]  ;;  %vm134_vm1 = vcmask 523264   ;;  %vm208_vm2 = vcmask 517120  }
   0xf   :  { %386 = vmatprep.mubr.msk.f32.mxu1 %vm439_vm0, %v438_v0  ;;  %367 = vmatprep.mubr.msk.f32.mxu0 %vm439_vm0, %v438_v0  ;;  %v130_v6 = vld [vmem:[%s569_s4 + $0x28] sm:$0xff]  ;;  %v50_v7 = vld [vmem:[#allocation2 + $0x60] sm:$0xff]  ;;  %v49_v9 = vld [vmem:[#allocation2 + $0x58] sm:$0xff] }
  0x10   :  { %336 = vmatpush3.msra.mxu0 %v53_v1  ;;  %371 = vmatpush3.msra.mxu1 %v132_v2  ;;  %v129_v8 = vld [vmem:[%s569_s4 + $0x20] sm:$0xff]  ;;  %v128_v10 = vld [vmem:[%s569_s4 + $0x18] sm:$0xff]  ;;  %v48_v11 = vld [vmem:[#allocation2 + $0x50] sm:$0xff] }
  0x11   :  { %337 = vmatprep.subr.mxu0 %v438_v0  ;;  %372 = vmatprep.subr.mxu1 %v438_v0  ;;  %v127_v12 = vld [vmem:[%s569_s4 + $0x10] sm:$0xff]  ;;  %v47_v13 = vld [vmem:[#allocation2 + $0x48] sm:$0xff]  ;;  %v46_v15 = vld [vmem:[#allocation2 + $0x40] sm:$0xff] }
  0x12   :  { %338 = vmatpush3.msra.mxu0 %v52_v3  ;;  %373 = vmatpush3.msra.mxu1 %v131_v4  ;;  %v126_v14 = vld [vmem:[%s569_s4 + $0x8] sm:$0xff]  ;;  %v125_v16 = vld [vmem:[%s569_s4] sm:$0xff]  ;;  %v45_v18 = vld [vmem:[#allocation2 + $0x38] sm:$0xff] }
  0x13   :  { %339 = vmatprep.subr.mxu0 %v438_v0  ;;  %374 = vmatprep.subr.mxu1 %v438_v0  ;;  %v133_v17 = vld [vmem:[%s566_s1] sm:$0x3]  ;;  %v44_v19 = vld [vmem:[#allocation2 + $0x30] sm:$0xff]  ;;  %v43_v20 = vld [vmem:[#allocation2 + $0x28] sm:$0xff] }
  0x14   :  { %340 = vmatpush3.msra.mxu0 %v51_v5  ;;  %375 = vmatpush3.msra.mxu1 %v130_v6  ;;  %v42_v21 = vld [vmem:[#allocation2 + $0x20] sm:$0xff]  ;;  %v41_v22 = vld [vmem:[#allocation2 + $0x18] sm:$0xff]  ;;  %v40_v23 = vld [vmem:[#allocation2 + $0x10] sm:$0xff] }
  0x15   :  { %341 = vmatprep.subr.mxu0 %v438_v0  ;;  %376 = vmatprep.subr.mxu1 %v438_v0  ;;  %v39_v24 = vld [vmem:[#allocation2 + $0x8] sm:$0xff]  ;;  %v38_v25 = vld [vmem:[#allocation2] sm:$0xff] }
  0x16   :  { %342 = vmatpush3.msra.mxu0 %v50_v7  ;;  %377 = vmatpush3.msra.mxu1 %v129_v8  ;;  %v37_v26 = vld [vmem:[%s565_s0] sm:$0xf] }
  0x17   :  { %343 = vmatprep.subr.mxu0 %v438_v0  ;;  %378 = vmatprep.subr.mxu1 %v438_v0  ;;  %v210_v27 = vld [vmem:[%s567_s2] sm:$0x3] }
  0x18   :  { %344 = vmatpush3.msra.mxu0 %v49_v9  ;;  %379 = vmatpush3.msra.mxu1 %v128_v10 }
  0x19   :  { %345 = vmatprep.subr.mxu0 %v438_v0  ;;  %380 = vmatprep.subr.mxu1 %v438_v0 }
  0x1a   :  { %346 = vmatpush3.msra.mxu0 %v48_v11  ;;  %381 = vmatpush3.msra.mxu1 %v127_v12 }
  0x1b   :  { %347 = vmatprep.subr.mxu0 %v438_v0  ;;  %382 = vmatprep.subr.mxu1 %v438_v0 }
  0x1c   :  { %348 = vmatpush3.msra.mxu0 %v47_v13  ;;  %383 = vmatpush3.msra.mxu1 %v126_v14 }
  0x1d   :  { %349 = vmatprep.subr.mxu0 %v438_v0  ;;  %384 = vmatprep.subr.mxu1 %v438_v0 }
  0x1e   :  { %350 = vmatpush3.msra.mxu0 %v46_v15  ;;  %385 = vmatpush3.msra.mxu1 %v125_v16 }
  0x1f   :  { %351 = vmatprep.subr.mxu0 %v438_v0  ;;  %387 = vmatmul.mubr.msk.f32.vlgmr.msra.gmra.mxu1 %vm134_vm1, %v133_v17 }
  0x20   :  { %389 = vmatprep.subr.mxu1 %v438_v0  ;;  %352 = vmatpush3.msra.mxu0 %v45_v18 }
  0x21   :  { %390 = vmatpush3.msra.mxu1 %v132_v2  ;;  %353 = vmatprep.subr.mxu0 %v438_v0 }
  0x22   :  { %391 = vmatprep.subr.mxu1 %v438_v0  ;;  %354 = vmatpush3.msra.mxu0 %v44_v19 }
  0x23   :  { %392 = vmatpush3.msra.mxu1 %v131_v4  ;;  %355 = vmatprep.subr.mxu0 %v438_v0 }
  0x24   :  { %393 = vmatprep.subr.mxu1 %v438_v0  ;;  %356 = vmatpush3.msra.mxu0 %v43_v20 }
  0x25   :  { %394 = vmatpush3.msra.mxu1 %v130_v6  ;;  %357 = vmatprep.subr.mxu0 %v438_v0 }
  0x26   :  { %395 = vmatprep.subr.mxu1 %v438_v0  ;;  %358 = vmatpush3.msra.mxu0 %v42_v21 }
  0x27   :  { %396 = vmatpush3.msra.mxu1 %v129_v8  ;;  %359 = vmatprep.subr.mxu0 %v438_v0 }
  0x28   :  { %397 = vmatprep.subr.mxu1 %v438_v0  ;;  %360 = vmatpush3.msra.mxu0 %v41_v22 }
  0x29   :  { %398 = vmatpush3.msra.mxu1 %v128_v10  ;;  %361 = vmatprep.subr.mxu0 %v438_v0 }
  0x2a   :  { %399 = vmatprep.subr.mxu1 %v438_v0  ;;  %362 = vmatpush3.msra.mxu0 %v40_v23 }
  0x2b   :  { %400 = vmatpush3.msra.mxu1 %v127_v12  ;;  %363 = vmatprep.subr.mxu0 %v438_v0 }
  0x2c   :  { %401 = vmatprep.subr.mxu1 %v438_v0  ;;  %364 = vmatpush3.msra.mxu0 %v39_v24 }
  0x2d   :  { %402 = vmatpush3.msra.mxu1 %v126_v14  ;;  %365 = vmatprep.subr.mxu0 %v438_v0 }
  0x2e   :  { %403 = vmatprep.subr.mxu1 %v438_v0  ;;  %366 = vmatpush3.msra.mxu0 %v38_v25 }
  0x2f   :  { %404 = vmatpush3.msra.mxu1 %v125_v16  ;;  %405 = vmatprep.mubr.msk.f32.mxu1 %vm439_vm0, %v438_v0 }
  0x30   :  { %368 = vmatmul.mubr.f32.vlgmr.msra.gmra.mxu0 %v37_v26  ;;  %406 = vmatmul.mubr.msk.f32.vlgmr.msra.gmra.mxu1 %vm134_vm1, %v210_v27 }
  0xdf   :  { %v204_v28 = vpop.f32.mrf.mxu1 }
  0xe0   :  { %209 = vst.msk [vmem:[%s571_s6] sm:$0x3] %vm208_vm2, %v204_v28 }
  0xe1   :  { %v388_v29 = vpop.f32.mrf.mxu1 }
  0xf0   :  { %v120_v30 = vpop.f32.mrf.mxu0  ;;  %v280_v31 = vpop.f32.mrf.mxu1 }
  0xf1   :  { %v121_v32 = vadd.f32 128.0, %v120_v30  ;;  %284 = vst.msk [vmem:[%s572_s7] sm:$0x3] %vm208_vm2, %v280_v31 }
  0xf2   :  { %v369_v33 = vpop.f32.mrf.mxu0  ;;  %v407_v34 = vpop.f32.mrf.mxu1 }
  0xf3   :  { %124 = vst [vmem:[%s570_s5] sm:$0xf] %v121_v32 }
  0xf4   :  { %297 = vsyncpa [#allocation3], 1 }

// kernel: decompress_jpeg.3
= control target key start
LH: loop header
LB: loop body
LE: loop exit
PB: predicated region body
PF: predicated region fallthrough
CT: control target
= control target key end

     0   :  { %s472_s12 = smov 0   ;;  %s474_s13 = smov 0   ;;  %s511_s0 = inlined_call_operand.vmem [shape: f32[2,2,128], index: 0, kind: input, shape index: {}]   ;;  %s512_s1 = inlined_call_operand.vmem [shape: f32[2,2,128], index: 1, kind: input, shape index: {}]   ;;  %s513_s2 = inlined_call_operand.vmem [shape: f32[2,2,128], index: 2, kind: input, shape index: {}]   ;;  %s514_s3 = inlined_call_operand.vmem [shape: f32[2,3,2,128], index: 3, kind: output, shape index: {}]  }
   0x1   :  { %s476_s14 = smov 0  }
   0x2 LB: > { %s25_s15 = sadd.s32 1, %s446_s13  ;;  %p394_p0 = scmp.ge.s32.totalorder %s450_s14, 1  ;;  %s450_s14 = sphi %s476_s14, %s13_s14   ;;  %s446_s13 = sphi %s474_s13, %s516_s13   ;;  %s442_s12 = sphi %s472_s12, %s515_s12  }
   0x3   : > { %p27_p1 = scmp.ge.s32.totalorder %s25_s15, 2  ;;  %p183_p2 = scmp.lt.s32.totalorder %s450_s14, 3 }
   0x5   : > { %s518_s15 = smov (%p27_p1, %s25_s15), 0  ;;  %p184_p3 = pnand %p394_p0, %p183_p2 }
   0x6   : > { %p226_p4 = scmp.lt.s32.totalorder (!%p184_p3), %s442_s12, 1 }
   0x7   : > { %187 = sbr.rel (%p184_p3) target bundleno = 31 (0x1f), region = 32 }
   0xc   : > { %s520_s12 = smov (!%p226_p4, %s442_s12), 1 }
   0xd   : > { %s395_s16 = sshll.u32 %s520_s12, 1  ;;  %s403_s26 = smul.u32 6, %s520_s12 }
   0xe   : > { %s232_s19 = scalar_lea.vmem %s511_s0, %s395_s16  ;;  %s246_s22 = scalar_lea.vmem %s513_s2, %s395_s16 }
   0xf   : > { %v257_v0 = vld [vmem:[%s246_s22] sm:$0x3]  ;;  %s239_s25 = scalar_lea.vmem %s512_s1, %s395_s16  ;;  %s254_s29 = scalar_lea.vmem %s514_s3, %s403_s26 }
  0x10   : > { %v255_v1 = vld [vmem:[%s232_s19] sm:$0x3]  ;;  %v258_v2 = vmul.f32 1.402, %v257_v0  ;;  %v266_v5 = vmul.f32 0.714136, %v257_v0 }
  0x11   : > { %v256_v3 = vld [vmem:[%s239_s25] sm:$0x3] }
  0x12   : > { %v264_v4 = vmul.f32 0.344136, %v256_v3  ;;  %v273_v6 = vmul.f32 1.772, %v256_v3  ;;  %v259_v7 = vadd.f32 %v258_v2, %v255_v1 }
  0x14   : > { %v265_v8 = vsub.f32 %v255_v1, %v264_v4  ;;  %v274_v9 = vadd.f32 %v273_v6, %v255_v1  ;;  %v260_v10 = vmax.f32 %v259_v7, 0.0 }
  0x16   : > { %v267_v11 = vsub.f32 %v265_v8, %v266_v5  ;;  %v275_v12 = vmax.f32 %v274_v9, 0.0  ;;  %v261_v13 = vmin.f32 %v260_v10, 255.0 }
  0x18   : > { %v268_v14 = vmax.f32 %v267_v11, 0.0  ;;  %v276_v15 = vmin.f32 %v275_v12, 255.0  ;;  %v262_v16 = vmul.f32 0.003921569, %v261_v13 }
  0x1a   : > { %v269_v17 = vmin.f32 %v268_v14, 255.0  ;;  %v277_v18 = vmul.f32 0.003921569, %v276_v15  ;;  %263 = vst [vmem:[%s254_s29] sm:$0x3] %v262_v16 }
  0x1c   : > { %v270_v19 = vmul.f32 0.003921569, %v269_v17  ;;  %400 = vst [vmem:[%s254_s29 + $0x4] sm:$0x3] %v277_v18 }
  0x1e   : > { %399 = vst [vmem:[%s254_s29 + $0x2] sm:$0x3] %v270_v19 }
  0x1f PF: > { %s13_s14 = sadd.s32 1, %s450_s14   ;;  %s515_s12 = smov %s446_s13 }
  0x20   : > { %p10_p5 = scmp.ge.s32.totalorder %s13_s14, 4   ;;  %s516_s13 = smov %s518_s15 }
  0x22   :  { %12 = sbr.rel (!%p10_p5) target bundleno = 2 (0x2), region = 70 }

</bundles_post_ra>
